<compile_context>
chip_gen: v7x
topology: tpu7x:2x2x1
jax: 0.10.0
libtpu: 0.0.40
codegen_flags: <defaults>
</compile_context>

<pallas_src>
import functools

import jax
import jax.numpy as jnp
from jax import lax
from jax.experimental import pallas as pl
from jax.experimental.pallas import tpu as pltpu

EPS = 1e-5                      # nn.LayerNorm default eps
NEG_INF = -1e30                 # additive mask for padded keys
TOKEN_TILE = 128                # token tile for the dense kernels (v5e-safe)
TOKEN_PAD = 128                 # pad token axis to a lane-dense multiple
VMEM_LIMIT_BYTES = 48 * 1024 * 1024   # > 32 MiB scoped default, < v7x 64 MiB physical
EXACT_GELU = True               # False -> tanh-approx GELU (EUP path, small numeric delta)


def _cparams(n_parallel_grid_axes=None):
    if n_parallel_grid_axes is None:
        return pltpu.CompilerParams(vmem_limit_bytes=VMEM_LIMIT_BYTES)
    return pltpu.CompilerParams(
        dimension_semantics=("parallel",) * n_parallel_grid_axes,
        vmem_limit_bytes=VMEM_LIMIT_BYTES)


def _layernorm(x, w, b):
    # x: (rows, D) f32, w/b: (1, D) f32
    mu = jnp.mean(x, axis=-1, keepdims=True)
    var = jnp.mean(jnp.square(x - mu), axis=-1, keepdims=True)
    return (x - mu) * lax.rsqrt(var + EPS) * w + b


# ---------------------------------------------------------------------------
# Kernels
# ---------------------------------------------------------------------------
def patch_embed_kernel(xp_ref, w_ref, b_ref, pos_ref, o_ref):
    # xp: (1, Np, P) bf16  w: (P, D) bf16  b: (1, D) f32  pos: (Np, D) f32
    y = jnp.dot(xp_ref[0], w_ref[...], preferred_element_type=jnp.float32)
    o_ref[0] = (y + b_ref[...] + pos_ref[...]).astype(o_ref.dtype)


def qkv_kernel(x_ref, ln1w_ref, ln1b_ref, wqkv_ref, o_ref):
    # LN1 + QKV projection over one token tile.  x: (tm, D) bf16, wqkv: (D, 3D) bf16.
    x = x_ref[...].astype(jnp.float32)
    h = _layernorm(x, ln1w_ref[...], ln1b_ref[...])
    qkv = jnp.dot(h.astype(jnp.bfloat16), wqkv_ref[...],
                  preferred_element_type=jnp.float32)
    o_ref[...] = qkv.astype(o_ref.dtype)


def attn_head_kernel(q_ref, k_ref, v_ref, o_ref, *, n_tokens):
    # One (batch, head) pair per grid step.  q/k/v: (1, N_pad, hd) bf16.
    q = q_ref[0]
    k = k_ref[0]
    v = v_ref[0]
    n_pad, hd = q.shape
    scale = float(hd) ** -0.5

    s = jnp.einsum("qd,kd->qk", q, k,
                   preferred_element_type=jnp.float32) * scale     # (N_pad, N_pad)
    key_idx = lax.broadcasted_iota(jnp.int32, (1, n_pad), 1)
    s = jnp.where(key_idx < n_tokens, s, NEG_INF)                  # mask padded keys
    s = s - jnp.max(s, axis=-1, keepdims=True)
    p = jnp.exp(s)
    p = p * pl.reciprocal(jnp.sum(p, axis=-1, keepdims=True), approx=True)
    ctx = jnp.dot(p.astype(jnp.bfloat16), v,
                  preferred_element_type=jnp.float32)              # (N_pad, hd)
    o_ref[0] = ctx.astype(o_ref.dtype)


def proj_mlp_kernel(x_ref, ctx_ref, wproj_ref, bproj_ref, ln2w_ref, ln2b_ref,
                    w1_ref, b1_ref, w2_ref, b2_ref, o_ref):
    # out-proj + residual + LN2 + MLP + residual over one token tile.
    x = x_ref[...].astype(jnp.float32)                             # (tm, D)
    attn = jnp.dot(ctx_ref[...], wproj_ref[...],
                   preferred_element_type=jnp.float32) + bproj_ref[...]
    x = x + attn
    h = _layernorm(x, ln2w_ref[...], ln2b_ref[...])
    m = jnp.dot(h.astype(jnp.bfloat16), w1_ref[...],
                preferred_element_type=jnp.float32) + b1_ref[...]
    m = jax.nn.gelu(m, approximate=not EXACT_GELU)                 # exact erf (PyTorch nn.GELU)
    m = jnp.dot(m.astype(jnp.bfloat16), w2_ref[...],
                preferred_element_type=jnp.float32) + b2_ref[...]
    o_ref[...] = (x + m).astype(o_ref.dtype)


def head_kernel(cls_ref, lnw_ref, lnb_ref, hw_ref, hb_ref, o_ref):
    # Final LayerNorm on the CLS row + Linear head (post_activation='none').
    c = _layernorm(cls_ref[...].astype(jnp.float32), lnw_ref[...], lnb_ref[...])
    o_ref[...] = jnp.dot(c.astype(jnp.bfloat16), hw_ref[...],
                         preferred_element_type=jnp.float32) + hb_ref[...]


# ---------------------------------------------------------------------------
# Wrappers (layout plumbing only — all compute is in the kernels above)
# ---------------------------------------------------------------------------
def patch_embed(x_nchw, conv_w, conv_b, pos_embed, patch_size):
    B, C, H, W = x_nchw.shape
    p = patch_size
    gh, gw = H // p, W // p
    Np = gh * gw
    D = conv_w.shape[0]
    P = C * p * p
    # Non-overlapping patch extraction == Conv2d(kernel=p, stride=p).
    xp = x_nchw.reshape(B, C, gh, p, gw, p)
    xp = xp.transpose(0, 2, 4, 1, 3, 5).reshape(B, Np, P).astype(jnp.bfloat16)
    w = conv_w.reshape(D, P).T                                     # (P, D) bf16
    return pl.pallas_call(
        patch_embed_kernel,
        grid=(B,),
        in_specs=[
            pl.BlockSpec((1, Np, P), lambda b: (b, 0, 0)),
            pl.BlockSpec((P, D), lambda b: (0, 0)),
            pl.BlockSpec((1, D), lambda b: (0, 0)),
            pl.BlockSpec((Np, D), lambda b: (0, 0)),
        ],
        out_specs=pl.BlockSpec((1, Np, D), lambda b: (b, 0, 0)),
        out_shape=jax.ShapeDtypeStruct((B, Np, D), jnp.bfloat16),
        compiler_params=_cparams(1),
    )(xp, w, conv_b.reshape(1, D), pos_embed)


def transformer_block(h, blk, *, num_heads, n_tokens):
    B, n_pad, D = h.shape
    (ln1w, ln1b, wqkv, wproj, bproj, ln2w, ln2b, w1, b1, w2, b2) = blk
    hd = D // num_heads
    mlp_dim = w1.shape[1]
    T = B * n_pad
    tm = TOKEN_TILE
    assert T % tm == 0
    x2d = h.reshape(T, D)

    # ---- LN1 + QKV projection, token-tiled, weights resident ---------------
    qkv = pl.pallas_call(
        qkv_kernel,
        grid=(T // tm,),
        in_specs=[
            pl.BlockSpec((tm, D), lambda t: (t, 0)),
            pl.BlockSpec((1, D), lambda t: (0, 0)),
            pl.BlockSpec((1, D), lambda t: (0, 0)),
            pl.BlockSpec((D, 3 * D), lambda t: (0, 0)),
        ],
        out_specs=pl.BlockSpec((tm, 3 * D), lambda t: (t, 0)),
        out_shape=jax.ShapeDtypeStruct((T, 3 * D), jnp.bfloat16),
        compiler_params=_cparams(1),
    )(x2d, ln1w, ln1b, wqkv)

    # ---- layout plumbing (XLA, outside kernels): (T, 3D) -> 3 x (B*H, N, hd)
    # Feature order of the qkv weight is (3, heads, head_dim) as in MONAI SABlock.
    qkv = qkv.reshape(B, n_pad, 3, num_heads, hd)
    qkv = qkv.transpose(2, 0, 3, 1, 4).reshape(3, B * num_heads, n_pad, hd)
    q, k, v = qkv[0], qkv[1], qkv[2]

    # ---- masked softmax attention, grid over (batch * heads) ---------------
    ctx = pl.pallas_call(
        functools.partial(attn_head_kernel, n_tokens=n_tokens),
        grid=(B * num_heads,),
        in_specs=[pl.BlockSpec((1, n_pad, hd), lambda i: (i, 0, 0))] * 3,
        out_specs=pl.BlockSpec((1, n_pad, hd), lambda i: (i, 0, 0)),
        out_shape=jax.ShapeDtypeStruct((B * num_heads, n_pad, hd), jnp.bfloat16),
        compiler_params=_cparams(1),
    )(q, k, v)

    ctx2d = ctx.reshape(B, num_heads, n_pad, hd).transpose(0, 2, 1, 3).reshape(T, D)

    # ---- out-proj + residual + LN2 + MLP + residual, token-tiled ------------
    y2d = pl.pallas_call(
        proj_mlp_kernel,
        grid=(T // tm,),
        in_specs=[
            pl.BlockSpec((tm, D), lambda t: (t, 0)),       # residual stream
            pl.BlockSpec((tm, D), lambda t: (t, 0)),       # attention context
            pl.BlockSpec((D, D), lambda t: (0, 0)),        # wproj
            pl.BlockSpec((1, D), lambda t: (0, 0)),        # bproj
            pl.BlockSpec((1, D), lambda t: (0, 0)),        # ln2 w
            pl.BlockSpec((1, D), lambda t: (0, 0)),        # ln2 b
            pl.BlockSpec((D, mlp_dim), lambda t: (0, 0)),  # w1
            pl.BlockSpec((1, mlp_dim), lambda t: (0, 0)),  # b1
            pl.BlockSpec((mlp_dim, D), lambda t: (0, 0)),  # w2
            pl.BlockSpec((1, D), lambda t: (0, 0)),        # b2
        ],
        out_specs=pl.BlockSpec((tm, D), lambda t: (t, 0)),
        out_shape=jax.ShapeDtypeStruct((T, D), jnp.bfloat16),
        compiler_params=_cparams(1),
    )(x2d, ctx2d, wproj, bproj, ln2w, ln2b, w1, b1, w2, b2)

    # NOTE: input_output_aliases is intentionally not used here — every layer's
    # output stays live in hidden_states_out, so aliasing would just force XLA
    # to insert defensive copies.
    return y2d.reshape(B, n_pad, D)


def classification_head(h, ln_w, ln_b, head_w, head_b):
    B = h.shape[0]
    D, num_classes = head_w.shape
    c_pad = pl.cdiv(num_classes, 128) * 128                 # lane-dense logits slab
    hw = jnp.zeros((D, c_pad), jnp.bfloat16).at[:, :num_classes].set(head_w)
    hb = jnp.zeros((1, c_pad), jnp.float32).at[:, :num_classes].set(head_b)
    cls = h[:, 0, :]          # LayerNorm is per-token: LN(x)[:, 0] == LN(x[:, 0])
    logits = pl.pallas_call(
        head_kernel,
        out_shape=jax.ShapeDtypeStruct((B, c_pad), jnp.float32),
        in_specs=[pl.BlockSpec(memory_space=pltpu.MemorySpace.VMEM)] * 5,
        out_specs=pl.BlockSpec(memory_space=pltpu.MemorySpace.VMEM),
        compiler_params=_cparams(None),
    )(cls, ln_w, ln_b, hw, hb)
    return logits[:, :num_classes]


def vit_forward(x_nchw, params, *, patch_size, num_heads):
    emb = patch_embed(x_nchw, params["conv_w"], params["conv_b"],
                      params["pos_embed"], patch_size)              # (B, Np, D) bf16
    B, Np, D = emb.shape
    cls = jnp.broadcast_to(params["cls_token"].astype(jnp.bfloat16), (B, 1, D))
    h = jnp.concatenate([cls, emb], axis=1)                         # (B, Np+1, D)

    n_tokens = Np + 1
    n_pad = pl.cdiv(n_tokens, TOKEN_PAD) * TOKEN_PAD
    h = jnp.pad(h, ((0, 0), (0, n_pad - n_tokens), (0, 0)))         # pad once, mask in-kernel

    hidden_states_out = []
    for blk in params["blocks"]:
        h = transformer_block(h, blk, num_heads=num_heads, n_tokens=n_tokens)
        hidden_states_out.append(h[:, :n_tokens, :])

    logits = classification_head(h, params["ln_w"], params["ln_b"],
                                 params["head_w"], params["head_b"])
    return logits, hidden_states_out


# ---------------------------------------------------------------------------
# Deterministic parameter init (shapes from the module __init__)
# ---------------------------------------------------------------------------
def init_params(key, *, in_channels, patch_size, n_patches, hidden, mlp_dim,
                num_layers, num_classes):
    keys = iter(jax.random.split(key, 8 * num_layers + 16))
    bf = jnp.bfloat16

    def nrm(shape, std=0.02, dtype=jnp.float32):
        return (jax.random.normal(next(keys), shape, jnp.float32) * std).astype(dtype)

    params = {
        "conv_w": nrm((hidden, in_channels, patch_size, patch_size), dtype=bf),
        "conv_b": nrm((hidden,)),
        "pos_embed": nrm((n_patches, hidden)),                  # learnable pos emb
        "cls_token": jnp.zeros((1, 1, hidden), jnp.float32),    # nn.Parameter(zeros)
        "blocks": [],
        "ln_w": jnp.ones((1, hidden), jnp.float32),
        "ln_b": jnp.zeros((1, hidden), jnp.float32),
        "head_w": nrm((hidden, num_classes), dtype=bf),
        "head_b": nrm((1, num_classes)),
    }
    for _ in range(num_layers):
        params["blocks"].append((
            jnp.ones((1, hidden), jnp.float32),     # ln1 weight
            jnp.zeros((1, hidden), jnp.float32),    # ln1 bias
            nrm((hidden, 3 * hidden), dtype=bf),    # qkv weight (qkv_bias=False)
            nrm((hidden, hidden), dtype=bf),        # attn out-proj weight
            nrm((1, hidden)),                       # attn out-proj bias
            jnp.ones((1, hidden), jnp.float32),     # ln2 weight
            jnp.zeros((1, hidden), jnp.float32),    # ln2 bias
            nrm((hidden, mlp_dim), dtype=bf),       # mlp linear1 weight
            nrm((1, mlp_dim)),                      # mlp linear1 bias
            nrm((mlp_dim, hidden), dtype=bf),       # mlp linear2 weight
            nrm((1, hidden)),                       # mlp linear2 bias
        ))
    return params


if __name__ == "__main__":
    # Small config consistent with the module: 2D, single-channel image.
    B, C, H, W = 2, 1, 16, 16
    PATCH = 8
    HIDDEN = 32
    MLP_DIM = 64
    NUM_LAYERS = 2
    NUM_HEADS = 4
    NUM_CLASSES = 2
    N_PATCHES = (H // PATCH) * (W // PATCH)

    key = jax.random.PRNGKey(0)
    kx, kp = jax.random.split(key)
    x = jax.random.normal(kx, (B, C, H, W), jnp.float32)

    params = init_params(kp, in_channels=C, patch_size=PATCH,
                         n_patches=N_PATCHES, hidden=HIDDEN, mlp_dim=MLP_DIM,
                         num_layers=NUM_LAYERS, num_classes=NUM_CLASSES)

    logits, hidden_states = vit_forward(x, params, patch_size=PATCH,
                                        num_heads=NUM_HEADS)
    jax.block_until_ready(logits)
    jax.block_until_ready(hidden_states)

    assert logits.shape == (B, NUM_CLASSES)
    assert len(hidden_states) == NUM_LAYERS
    assert all(hs.shape == (B, N_PATCHES + 1, HIDDEN) for hs in hidden_states)
    assert bool(jnp.all(jnp.isfinite(logits)))
    print("KERNEL_OK")
</pallas_src>

<mosaic_0001>
module attributes {stable_mosaic.version = 11 : i64} {
  func.func @patch_embed_kernel(%arg0: i32, %arg1: memref<1x4x64xbf16, #tpu.memory_space<vmem>>, %arg2: memref<64x32xbf16, #tpu.memory_space<vmem>>, %arg3: memref<1x32xf32, #tpu.memory_space<vmem>>, %arg4: memref<4x32xf32, #tpu.memory_space<vmem>>, %arg5: memref<1x4x32xbf16, #tpu.memory_space<vmem>>) attributes {dimension_semantics = [#tpu.dimension_semantics<parallel>], iteration_bounds = array<i64: 2>, scalar_prefetch = 0 : i64, scratch_operands = 0 : i64, tpu.core_type = #tpu.core_type<tc>, window_params = [{transform_indices = @transform_0, window_bounds = array<i64: 1, 4, 64>}, {pipeline_mode = #tpu.pipeline_mode<synchronous>, transform_indices = @transform_1, window_bounds = array<i64: 64, 32>}, {pipeline_mode = #tpu.pipeline_mode<synchronous>, transform_indices = @transform_2, window_bounds = array<i64: 1, 32>}, {pipeline_mode = #tpu.pipeline_mode<synchronous>, transform_indices = @transform_3, window_bounds = array<i64: 4, 32>}, {transform_indices = @transform_4, window_bounds = array<i64: 1, 4, 32>}]} {
    %c0 = arith.constant 0 : index
    %c0_0 = arith.constant 0 : index
    %c0_1 = arith.constant 0 : index
    %0 = vector.load %arg1[%c0, %c0_0, %c0_1] : memref<1x4x64xbf16, #tpu.memory_space<vmem>>, vector<1x4x64xbf16>
    %1 = vector.shape_cast %0 : vector<1x4x64xbf16> to vector<4x64xbf16>
    %c0_2 = arith.constant 0 : index
    %c0_3 = arith.constant 0 : index
    %2 = vector.load %arg2[%c0_2, %c0_3] : memref<64x32xbf16, #tpu.memory_space<vmem>>, vector<64x32xbf16>
    %cst = arith.constant dense<0.000000e+00> : vector<4x32xf32>
    %3 = tpu.matmul %1, %2, %cst {dimension_numbers = #tpu.dot_dimension_numbers<[1], [0], [0], [1], [0, 0, 1, 1], [], []>} : vector<4x64xbf16>, vector<64x32xbf16>, vector<4x32xf32> -> vector<4x32xf32>
    %c0_4 = arith.constant 0 : index
    %c0_5 = arith.constant 0 : index
    %4 = vector.load %arg3[%c0_4, %c0_5] : memref<1x32xf32, #tpu.memory_space<vmem>>, vector<1x32xf32>
    %5 = vector.broadcast %4 : vector<1x32xf32> to vector<4x32xf32>
    %6 = arith.addf %3, %5 : vector<4x32xf32>
    %c0_6 = arith.constant 0 : index
    %c0_7 = arith.constant 0 : index
    %7 = vector.load %arg4[%c0_6, %c0_7] : memref<4x32xf32, #tpu.memory_space<vmem>>, vector<4x32xf32>
    %8 = arith.addf %6, %7 : vector<4x32xf32>
    %9 = arith.truncf %8 : vector<4x32xf32> to vector<4x32xbf16>
    %c0_8 = arith.constant 0 : index
    %c0_9 = arith.constant 0 : index
    %c0_10 = arith.constant 0 : index
    %10 = vector.load %arg5[%c0_8, %c0_9, %c0_10] : memref<1x4x32xbf16, #tpu.memory_space<vmem>>, vector<1x4x32xbf16>
    %11 = vector.shape_cast %10 : vector<1x4x32xbf16> to vector<4x32xbf16>
    %12 = vector.shape_cast %9 : vector<4x32xbf16> to vector<1x4x32xbf16>
    tpu.vector_store %arg5[%c0_8, %c0_9, %c0_10], %12 {strides = array<i32>} : memref<1x4x32xbf16, #tpu.memory_space<vmem>>, vector<1x4x32xbf16>,
    return
  }
  func.func @transform_0(%arg0: i32) -> (i32, i32, i32) {
    %c0_i32 = arith.constant 0 : i32
    %c0_i32_0 = arith.constant 0 : i32
    %c0_i32_1 = arith.constant 0 : i32
    return %arg0, %c0_i32, %c0_i32_0 : i32, i32, i32
  }
  func.func @transform_1(%arg0: i32) -> (i32, i32) {
    %c0_i32 = arith.constant 0 : i32
    %c0_i32_0 = arith.constant 0 : i32
    %c0_i32_1 = arith.constant 0 : i32
    return %c0_i32, %c0_i32_0 : i32, i32
  }
  func.func @transform_2(%arg0: i32) -> (i32, i32) {
    %c0_i32 = arith.constant 0 : i32
    %c0_i32_0 = arith.constant 0 : i32
    %c0_i32_1 = arith.constant 0 : i32
    return %c0_i32, %c0_i32_0 : i32, i32
  }
  func.func @transform_3(%arg0: i32) -> (i32, i32) {
    %c0_i32 = arith.constant 0 : i32
    %c0_i32_0 = arith.constant 0 : i32
    %c0_i32_1 = arith.constant 0 : i32
    return %c0_i32, %c0_i32_0 : i32, i32
  }
  func.func @transform_4(%arg0: i32) -> (i32, i32, i32) {
    %c0_i32 = arith.constant 0 : i32
    %c0_i32_0 = arith.constant 0 : i32
    %c0_i32_1 = arith.constant 0 : i32
    return %arg0, %c0_i32, %c0_i32_0 : i32, i32, i32
  }
}

</mosaic_0001>

<bundles_post_ra>
// kernel: tpu_custom_call.1
= control target key start
LH: loop header
LB: loop body
LE: loop exit
PB: predicated region body
PF: predicated region fallthrough
CT: control target
= control target key end

     0   :  { %9 = vsyncpa [#allocation3], 0  ;;  %s644_s0 = inlined_call_operand.vmem [shape: bf16[2,4,64], index: 0, kind: input, shape index: {}]   ;;  %s645_s1 = inlined_call_operand.vmem [shape: bf16[64,32], index: 1, kind: input, shape index: {}]   ;;  %s646_s2 = inlined_call_operand.vmem [shape: f32[1,32], index: 2, kind: input, shape index: {}]   ;;  %s647_s3 = inlined_call_operand.vmem [shape: f32[4,32], index: 3, kind: input, shape index: {}]   ;;  %s648_s4 = inlined_call_operand.hbm [shape: bf16[2,4,32], index: 4, kind: output, shape index: {}]  }
   0x1   :  { %11 = vsyncpa [#allocation3 + $0x1], 0  ;;  %s526_s15 = smov 0   ;;  %s528_s16 = smov 0  }
   0x2   :  { %s530_s17 = smov 0   ;;  %s532_s18 = smov 0  }
   0x3 LB: > { %s547_s19 = sadd.s32 4294967295, %s496_s18   ;;  %s356_s20 = sadd.s32 4294967294, %s496_s18   ;;  %s496_s18 = sphi %s532_s18, %s654_s18   ;;  %s492_s17 = sphi %s530_s17, %s653_s17   ;;  %s488_s16 = sphi %s528_s16, %s652_s16   ;;  %s484_s15 = sphi %s526_s15, %s651_s15  }
   0x4   : > { %s551_s21 = sadd.s32 1, %s496_s18   ;;  %s113_s22 = sadd.s32 1, %s492_s17 }
   0x5   : > { %s110_s23 = ssub.s32 %s496_s18, %s551_s21  ;;  %p123_p0 = scmp.ne.s32.totalorder %s492_s17, %s488_s16 }
   0x6   : > { %p111_p1 = scmp.eq.s32.totalorder %s110_s23, 0  ;;  %p124_p2 = scmp.eq.s32.totalorder %s547_s19, 1 }
   0x7   : > { %p129_p3 = scmp.ne.s32.totalorder %s488_s16, %s484_s15  ;;  %p130_p4 = scmp.eq.s32.totalorder %s356_s20, 1 }
   0x8   : > { %s562_s24 = scalar_select %p111_p1, %s492_s17, %s113_s22  }
   0x9   : > { %p564_p5 = por %p124_p2, %p123_p0  ;;  %p568_p6 = por %p130_p4, %p129_p3 }
   0xa   : > { %p359_p7 = scmp.ge.s32.totalorder %s496_s18, 1  ;;  %p164_p8 = scmp.lt.s32.totalorder %s496_s18, 3 }
   0xc   : > { %p165_p9 = pnand %p359_p7, %p164_p8 }
   0xd   : > { %v430_v0 = vld [vmem:[%s645_s1] sm:$0xff] (!%p165_p9)   ;;  %v498_v1 = vmov (!%p165_p9), 0.0   ;;  %v431_v2 = vld [vmem:[%s645_s1 + $0x8] sm:$0xff] (!%p165_p9)   ;;  %vm499_vm0 = vmmov (!%p165_p9), 0   ;;  %p189_p10 = scmp.lt.s32.totalorder (!%p165_p9), %s547_s19, 1  ;;  %v432_v3 = vld [vmem:[%s645_s1 + $0x10] sm:$0xff] (!%p165_p9)  }
   0xe   : > { %168 = sbr.rel (%p165_p9) target bundleno = 262 (0x106), region = 36  ;;  %377 = vmatprep.subr.bf16.mxu0 (!%p165_p9), %v498_v1  ;;  %385 = vmatprep.mubr.msk.bf16.mxu0 (!%p165_p9), %vm499_vm0, %v498_v1  ;;  %v433_v4 = vld [vmem:[%s645_s1 + $0x18] sm:$0xff] (!%p165_p9)   ;;  %vm234_vm1 = vcmask (!%p165_p9), 523264   ;;  %s186_s14 = sand.u32 (!%p165_p9), 1, %s488_s16   ;;  %v362_v6 = vld [vmem:[%s646_s2] ss:$0 sm:$0xff] (!%p165_p9) }
   0xf   : > { %378 = vmatpush3.bf16.msra.mxu0 (!%p165_p9), %v430_v0  ;;  %s360_s20 = sshll.u32 (!%p165_p9), %s186_s14, 1  ;;  %v278_v8 = vld [vmem:[%s647_s3] sm:$0xf] (!%p165_p9)  ;;  %s369_s29 = sshll.u32 (!%p165_p9), %s547_s19, 5  ;;  %vm281_vm2 = vcmask (!%p165_p9), 254976  }
  0x10   : > { %379 = vmatprep.subr.bf16.mxu0 (!%p165_p9), %v498_v1  ;;  %s188_s30 = scalar_lea.vmem (!%p165_p9), [#allocation2], %s360_s20  ;;  %s284_s9 = scalar_lea.sflag (!%p165_p9), [#allocation3], %s186_s14 }
  0x13   : > { %380 = vmatpush3.bf16.msra.mxu0 (!%p165_p9), %v431_v2 }
  0x14   : > { %381 = vmatprep.subr.bf16.mxu0 (!%p165_p9), %v498_v1 }
  0x15   : > { %s190_s5 = scalar_select %p189_p10, %s547_s19, 1 }
  0x16   : > { %s500_s19 = smov [#allocation2]  }
  0x17   : > { %s361_s8 = sshll.u32 %s190_s5, 1  ;;  %382 = vmatpush3.bf16.msra.mxu0 %v432_v3  ;;  %s297_s5 = sshll.u32 %s188_s30, 4  ;;  %s604_s5 = int_to_ptr.vmem [resolvable:$true] %s297_s5 }
  0x18   : > { %383 = vmatprep.subr.bf16.mxu0 %v498_v1  ;;  %s192_s13 = scalar_lea.vmem %s644_s0, %s361_s8  ;;  %s602_s8 = scalar_lea.hbm %s648_s4, %s369_s29 }
  0x19   : > { %v194_v5 = vld [vmem:[%s192_s13] sm:$0x3]  ;;  %s434_s10 = scalar_lea.vmem %s604_s5, 32  ;;  %s438_s11 = sshll.u32 %s500_s19, 4  ;;  %s439_s11 = int_to_ptr.vmem [resolvable:$false] %s438_s11 }
  0x1a   : > { %p435_p11 = scmp.ne.s32.totalorder %s604_s5, %s434_s10  ;;  %s440_s12 = scalar_lea.vmem %s439_s11, 64 }
  0x1b   : > { %384 = vmatpush3.bf16.msra.mxu0 %v433_v4  ;;  %p441_p0 = scmp.lt.s32.totalorder %s604_s5, %s439_s11  ;;  %p442_p1 = scmp.lt.s32.totalorder %s440_s12, %s434_s10 }
  0x1c   : > { %p436_p12 = pnand %p435_p11, %p564_p5 }
  0x1d   : > { %p443_p2 = por %p442_p1, %p441_p0 }
  0x1e   : > { %386 = vmatmul.mubr.msk.bf16.vlgmr.msra.gmra.mrb[0].mxu0 %vm234_vm1, %v194_v5  ;;  %p437_p13 = pneg %p436_p12 }
  0x20   : > { %p444_p3 = pnand %p443_p2, %p437_p13 }
  0xf1   : > { %v272_v7 = vpop.f32.mrb[0].mxu0 }
  0xf2   : > { %v273_v9 = vadd.f32 %v362_v6, %v272_v7  ;;  %v387_v10 = vpop.f32.mrb[1].mxu0 }
  0xf3   : > { %v275_v11 = vpop.f32.mrb[2].mxu0 }
  0xf4   : > { %v279_v12 = vadd.f32 %v278_v8, %v273_v9  ;;  %v388_v13 = vpop.f32.mrb[3].mxu0 }
  0xf6   : > { %v280_v14 = vpack.c.bf16 %v279_v12, %v279_v12 }
  0xf8   : > { %282 = vst.msk [vmem:[%s188_s30] sm:$0x3] %vm281_vm2, %v280_v14 }
  0xf9   : > { %447 = shalt.err (!%p444_p3)
}
  0xfa   : > { %s448_s13 = scalar_lea.hbm %s602_s8, 32  ;;  %s452_s22 = scalar_lea.hbm %s648_s4, 64 }
  0xfb   : > { %p449_p4 = scmp.ne.s32.totalorder %s602_s8, %s448_s13  ;;  %p453_p9 = scmp.lt.u32.totalorder %s602_s8, %s648_s4 }
  0xfc   : > { %p454_p10 = scmp.lt.u32.totalorder %s452_s22, %s448_s13  ;;  %p456_p12 = scmp.lt.u32.totalorder %s448_s13, %s602_s8 }
  0xfd   : > { %p450_p7 = pnand %p449_p4, %p564_p5 }
  0xfe   : > { %p455_p11 = por %p454_p10, %p453_p9 }
  0xff   : > { %p451_p8 = pneg %p450_p7 }
 0x100   : > { %p457_p13 = por %p456_p12, %p455_p11 }
 0x102   : > { %p458_p0 = pnand %p457_p13, %p451_p8 }
 0x104   : > { %461 = shalt.err (!%p458_p0)
}
 0x105   : > { %389 = dma.vmem_to_hbm [thread:$0]  (%p564_p5), %s604_s5, 32, %s602_s8, %s284_s9  }
 0x106 PF: > { %p395_p1 = scmp.ge.s32.totalorder %s496_s18, 2  ;;  %s309_s28 = sand.u32 1, %s484_s15  }
 0x107   : > { %s310_s29 = scalar_lea.sflag [#allocation3], %s309_s28 }
 0x108   : > { %p392_p2 = pnand %p395_p1, %p568_p6 }
 0x10a   : > { %479 = dma.done.wait (!%p392_p2), %s310_s29, 32  }
 0x10b   : > { %481 = vsyncadd (!%p392_p2), %s310_s29, 4294967264  ;;  %p14_p3 = scmp.ge.s32.totalorder %s551_s21, 4   ;;  %s651_s15 = smov %s488_s16 }
 0x10c   : > { %s652_s16 = smov %s492_s17  ;;  %s653_s17 = smov %s562_s24 }
 0x10d   : > { %s654_s18 = smov %s551_s21  ;;  %16 = sbr.rel (!%p14_p3) target bundleno = 3 (0x3), region = 71 }
 0x114   :  { %315 = vsyncpa [#allocation3], 1 }
 0x115   :  { %317 = vsyncpa [#allocation3 + $0x1], 1 }

</bundles_post_ra>
